<compile_context>
chip_gen: v7x
topology: tpu7x:2x2x1
jax: 0.10.0
libtpu: 0.0.40
codegen_flags: <defaults>
</compile_context>

<pallas_src>
import functools

import jax
import jax.numpy as jnp
from jax import lax
from jax.experimental import pallas as pl
from jax.experimental.pallas import tpu as pltpu


# ----------------------------------------------------------------------------
# Pallas kernel: DoubleConv (conv3x3 -> BN -> ReLU -> conv3x3 -> BN -> ReLU)
# Layout: activations are (C, P) with P = N*H*W in the lane dimension.
# Weights are pre-reshaped to (Cout, 9*Cin) in (dy, dx, ci) K-order, bf16.
# ----------------------------------------------------------------------------
def double_conv_kernel(x_ref, m_ref, w1_ref, g1_ref, b1_ref, w2_ref, g2_ref,
                       b2_ref, o_ref, *, W):
    P = x_ref.shape[-1]
    eps = 1e-5

    def im2col(a):
        # a: (C, P) f32, pixels in lanes.  Returns (9*C, P) bf16 with the 9
        # conv taps stacked along sublanes.  Spatial shifts = lane rotations
        # (XLU); the 1-pixel zero halo comes from the precomputed edge masks.
        cols = []
        for dy in range(3):
            for dx in range(3):
                t = dy * 3 + dx
                shift = (-((dy - 1) * W + (dx - 1))) % P
                shifted = a if shift == 0 else pltpu.roll(a, shift, axis=1)
                cols.append((shifted * m_ref[t]).astype(jnp.bfloat16))
        return jnp.concatenate(cols, axis=0)

    def bn_relu(y, g_ref, b_ref):
        # BatchNorm2d training stats over (N,H,W) == the lane axis, single
        # pass: var = E[y^2] - mean^2 (biased), fold gamma*rsqrt(var+eps)
        # into one scale, then affine + ReLU as one mul-add-max.
        mean = jnp.mean(y, axis=1, keepdims=True)
        var = jnp.mean(y * y, axis=1, keepdims=True) - mean * mean
        scale = g_ref[...] * lax.rsqrt(var + eps)
        shift = b_ref[...] - mean * scale
        return jnp.maximum(y * scale + shift, 0.0)

    # conv1: single MXU matmul, K = 9*Cin, output (Cmid, P) f32 (lane-dense).
    y1 = jnp.dot(w1_ref[...], im2col(x_ref[...]),
                 preferred_element_type=jnp.float32)
    h1 = bn_relu(y1, g1_ref, b1_ref)

    # conv2: single MXU matmul, K = 9*Cmid, output (Cout, P) f32.
    y2 = jnp.dot(w2_ref[...], im2col(h1),
                 preferred_element_type=jnp.float32)
    o_ref[...] = bn_relu(y2, g2_ref, b2_ref)


def _edge_masks(N, H, W):
    # (9, 1, N*H*W) f32 validity masks per 3x3 tap: 0.0 where the tap would
    # read outside the image (implements the conv's zero padding and stops
    # lane rolls from leaking across row / image boundaries).
    P = N * H * W
    p = jnp.arange(P, dtype=jnp.int32)
    xw = p % W
    yh = (p // W) % H
    cols = []
    for dy in range(3):
        for dx in range(3):
            oy, ox = dy - 1, dx - 1
            valid = ((yh + oy >= 0) & (yh + oy < H) &
                     (xw + ox >= 0) & (xw + ox < W))
            cols.append(valid.astype(jnp.float32))
    return jnp.stack(cols, axis=0).reshape(9, 1, P)


def double_conv_pallas(x_cm, N, H, W, params):
    Cin, P = x_cm.shape
    w1, w2 = params["w1"], params["w2"]
    Cmid, Cout = w1.shape[-1], w2.shape[-1]

    # HWIO -> (Co, 9*Ci); K ordered as (dy, dx, ci) to match im2col stacking.
    # bf16 MXU inputs (f32 accumulation happens in-kernel).
    w1t = jnp.transpose(w1, (3, 0, 1, 2)).reshape(Cmid, 9 * Cin).astype(jnp.bfloat16)
    w2t = jnp.transpose(w2, (3, 0, 1, 2)).reshape(Cout, 9 * Cmid).astype(jnp.bfloat16)
    g1 = params["g1"].reshape(Cmid, 1).astype(jnp.float32)
    b1 = params["b1"].reshape(Cmid, 1).astype(jnp.float32)
    g2 = params["g2"].reshape(Cout, 1).astype(jnp.float32)
    b2 = params["b2"].reshape(Cout, 1).astype(jnp.float32)
    masks = _edge_masks(N, H, W)

    vmem = pl.BlockSpec(memory_space=pltpu.MemorySpace.VMEM)
    kernel = functools.partial(double_conv_kernel, W=W)
    return pl.pallas_call(
        kernel,
        out_shape=jax.ShapeDtypeStruct((Cout, P), jnp.float32),
        in_specs=[vmem] * 8,
        out_specs=vmem,
    )(x_cm, masks, w1t, g1, b1, w2t, g2, b2)


# ----------------------------------------------------------------------------
# Plain-JAX glue: bilinear upsample (align_corners=True), pad, concat (NCHW)
# ----------------------------------------------------------------------------
def upsample_bilinear_2x_align_corners_nchw(x):
    N, C, H, W = x.shape
    Ho, Wo = 2 * H, 2 * W

    def src(out_size, in_size):
        if in_size == 1:
            return jnp.zeros((out_size,), jnp.float32)
        return jnp.arange(out_size, dtype=jnp.float32) * (in_size - 1) / (out_size - 1)

    sy, sx = src(Ho, H), src(Wo, W)
    y0 = jnp.floor(sy).astype(jnp.int32)
    y1 = jnp.minimum(y0 + 1, H - 1)
    wy = (sy - y0.astype(jnp.float32))[None, None, :, None]
    x0 = jnp.floor(sx).astype(jnp.int32)
    x1 = jnp.minimum(x0 + 1, W - 1)
    wx = (sx - x0.astype(jnp.float32))[None, None, None, :]

    rows = x[:, :, y0, :] * (1.0 - wy) + x[:, :, y1, :] * wy        # (N,C,Ho,W)
    out = rows[:, :, :, x0] * (1.0 - wx) + rows[:, :, :, x1] * wx   # (N,C,Ho,Wo)
    return out


def _upsample_pad_concat(x1_nchw, x2_nchw):
    x1 = upsample_bilinear_2x_align_corners_nchw(x1_nchw)
    diffY = x2_nchw.shape[2] - x1.shape[2]
    diffX = x2_nchw.shape[3] - x1.shape[3]
    x1 = jnp.pad(x1, ((0, 0), (0, 0),
                      (diffY // 2, diffY - diffY // 2),
                      (diffX // 2, diffX - diffX // 2)))
    return jnp.concatenate([x2_nchw, x1], axis=1)     # torch.cat dim=1


def up_forward(x1_nchw, x2_nchw, params):
    x = _upsample_pad_concat(x1_nchw, x2_nchw)        # (N, Cin, H, W)
    N, Cin, H, W = x.shape
    # channel-major, pixels-in-lanes layout for the kernel
    x_cm = jnp.transpose(x, (1, 0, 2, 3)).reshape(Cin, N * H * W)
    out_cm = double_conv_pallas(x_cm, N, H, W, params)            # (Cout, N*H*W)
    Cout = out_cm.shape[0]
    return jnp.transpose(out_cm.reshape(Cout, N, H, W), (1, 0, 2, 3))  # NCHW


# ----------------------------------------------------------------------------
# Pure-JAX reference (matches the kernel's bf16-MXU / f32-accum precision)
# ----------------------------------------------------------------------------
def ref_double_conv_nchw(x, w1, g1, b1, w2, g2, b2):
    def conv(a, w):
        return lax.conv_general_dilated(
            a.astype(jnp.bfloat16), w.astype(jnp.bfloat16), (1, 1), "SAME",
            dimension_numbers=("NCHW", "HWIO", "NCHW"),
            preferred_element_type=jnp.float32)

    def bn_relu(y, g, b):
        mean = jnp.mean(y, axis=(0, 2, 3), keepdims=True)
        var = jnp.mean((y - mean) ** 2, axis=(0, 2, 3), keepdims=True)
        yn = (y - mean) * lax.rsqrt(var + 1e-5)
        return jnp.maximum(yn * g.reshape(1, -1, 1, 1) + b.reshape(1, -1, 1, 1), 0.0)

    y = bn_relu(conv(x, w1), g1, b1)
    return bn_relu(conv(y, w2), g2, b2)


def ref_up_forward(x1_nchw, x2_nchw, params):
    x = _upsample_pad_concat(x1_nchw, x2_nchw)
    return ref_double_conv_nchw(x, params["w1"], params["g1"], params["b1"],
                                params["w2"], params["g2"], params["b2"])


# ----------------------------------------------------------------------------
if __name__ == "__main__":
    # Up(in_channels=8, out_channels=4, bilinear=True)
    #   -> DoubleConv(8, 4, mid_channels=4)
    in_channels, out_channels = 8, 4
    mid_channels = in_channels // 2
    N, H1, W1 = 2, 8, 8            # x1 spatial (gets upsampled x2 -> 16x16)

    key = jax.random.PRNGKey(0)
    k1, k2, k3, k4, k5, k6, k7, k8 = jax.random.split(key, 8)

    # Inputs in PyTorch NCHW convention.
    x1 = jax.random.normal(k1, (N, in_channels // 2, H1, W1), jnp.float32)
    x2 = jax.random.normal(k2, (N, in_channels // 2, 2 * H1, 2 * W1), jnp.float32)

    # Deterministic parameters.  Conv weights in HWIO (3,3,Cin,Cout).
    params = {
        "w1": 0.1 * jax.random.normal(k3, (3, 3, in_channels, mid_channels), jnp.float32),
        "g1": 1.0 + 0.05 * jax.random.normal(k4, (mid_channels,), jnp.float32),
        "b1": 0.05 * jax.random.normal(k5, (mid_channels,), jnp.float32),
        "w2": 0.1 * jax.random.normal(k6, (3, 3, mid_channels, out_channels), jnp.float32),
        "g2": 1.0 + 0.05 * jax.random.normal(k7, (out_channels,), jnp.float32),
        "b2": 0.05 * jax.random.normal(k8, (out_channels,), jnp.float32),
    }

    out = jax.block_until_ready(jax.jit(up_forward)(x1, x2, params))
    ref = jax.block_until_ready(ref_up_forward(x1, x2, params))

    assert out.shape == (N, out_channels, 2 * H1, 2 * W1), out.shape
    max_err = float(jnp.max(jnp.abs(out - ref)))
    assert jnp.allclose(out, ref, atol=3e-3, rtol=3e-3), max_err

    print("KERNEL_OK")
</pallas_src>

<mosaic_0001>
module attributes {stable_mosaic.version = 11 : i64} {
  func.func @double_conv_kernel(%arg0: memref<8x512xf32, #tpu.memory_space<vmem>>, %arg1: memref<9x1x512xf32, #tpu.memory_space<vmem>>, %arg2: memref<4x72xbf16, #tpu.memory_space<vmem>>, %arg3: memref<4x1xf32, #tpu.memory_space<vmem>>, %arg4: memref<4x1xf32, #tpu.memory_space<vmem>>, %arg5: memref<4x36xbf16, #tpu.memory_space<vmem>>, %arg6: memref<4x1xf32, #tpu.memory_space<vmem>>, %arg7: memref<4x1xf32, #tpu.memory_space<vmem>>, %arg8: memref<4x512xf32, #tpu.memory_space<vmem>>) attributes {dimension_semantics = [], scalar_prefetch = 0 : i64, scratch_operands = 0 : i64, tpu.core_type = #tpu.core_type<tc>} {
    %c0 = arith.constant 0 : index
    %c0_0 = arith.constant 0 : index
    %0 = vector.load %arg2[%c0, %c0_0] : memref<4x72xbf16, #tpu.memory_space<vmem>>, vector<4x72xbf16>
    %c0_1 = arith.constant 0 : index
    %c0_2 = arith.constant 0 : index
    %1 = vector.load %arg0[%c0_1, %c0_2] : memref<8x512xf32, #tpu.memory_space<vmem>>, vector<8x512xf32>
    %c17_i32 = arith.constant 17 : i32
    %2 = tpu.dynamic_rotate %1 by %c17_i32 dim 1 : vector<8x512xf32>, i32 -> vector<8x512xf32>
    %c0_3 = arith.constant 0 : index
    %c0_4 = arith.constant 0 : index
    %c0_5 = arith.constant 0 : index
    %3 = vector.load %arg1[%c0_3, %c0_4, %c0_5] : memref<9x1x512xf32, #tpu.memory_space<vmem>>, vector<1x1x512xf32>
    %4 = vector.shape_cast %3 : vector<1x1x512xf32> to vector<1x512xf32>
    %5 = vector.broadcast %4 : vector<1x512xf32> to vector<8x512xf32>
    %6 = arith.mulf %2, %5 : vector<8x512xf32>
    %7 = arith.truncf %6 : vector<8x512xf32> to vector<8x512xbf16>
    %c16_i32 = arith.constant 16 : i32
    %8 = tpu.dynamic_rotate %1 by %c16_i32 dim 1 : vector<8x512xf32>, i32 -> vector<8x512xf32>
    %c1 = arith.constant 1 : index
    %c0_6 = arith.constant 0 : index
    %c0_7 = arith.constant 0 : index
    %9 = vector.load %arg1[%c1, %c0_6, %c0_7] : memref<9x1x512xf32, #tpu.memory_space<vmem>>, vector<1x1x512xf32>
    %10 = vector.shape_cast %9 : vector<1x1x512xf32> to vector<1x512xf32>
    %11 = vector.broadcast %10 : vector<1x512xf32> to vector<8x512xf32>
    %12 = arith.mulf %8, %11 : vector<8x512xf32>
    %13 = arith.truncf %12 : vector<8x512xf32> to vector<8x512xbf16>
    %c15_i32 = arith.constant 15 : i32
    %14 = tpu.dynamic_rotate %1 by %c15_i32 dim 1 : vector<8x512xf32>, i32 -> vector<8x512xf32>
    %c2 = arith.constant 2 : index
    %c0_8 = arith.constant 0 : index
    %c0_9 = arith.constant 0 : index
    %15 = vector.load %arg1[%c2, %c0_8, %c0_9] : memref<9x1x512xf32, #tpu.memory_space<vmem>>, vector<1x1x512xf32>
    %16 = vector.shape_cast %15 : vector<1x1x512xf32> to vector<1x512xf32>
    %17 = vector.broadcast %16 : vector<1x512xf32> to vector<8x512xf32>
    %18 = arith.mulf %14, %17 : vector<8x512xf32>
    %19 = arith.truncf %18 : vector<8x512xf32> to vector<8x512xbf16>
    %c1_i32 = arith.constant 1 : i32
    %20 = tpu.dynamic_rotate %1 by %c1_i32 dim 1 : vector<8x512xf32>, i32 -> vector<8x512xf32>
    %c3 = arith.constant 3 : index
    %c0_10 = arith.constant 0 : index
    %c0_11 = arith.constant 0 : index
    %21 = vector.load %arg1[%c3, %c0_10, %c0_11] : memref<9x1x512xf32, #tpu.memory_space<vmem>>, vector<1x1x512xf32>
    %22 = vector.shape_cast %21 : vector<1x1x512xf32> to vector<1x512xf32>
    %23 = vector.broadcast %22 : vector<1x512xf32> to vector<8x512xf32>
    %24 = arith.mulf %20, %23 : vector<8x512xf32>
    %25 = arith.truncf %24 : vector<8x512xf32> to vector<8x512xbf16>
    %c4 = arith.constant 4 : index
    %c0_12 = arith.constant 0 : index
    %c0_13 = arith.constant 0 : index
    %26 = vector.load %arg1[%c4, %c0_12, %c0_13] : memref<9x1x512xf32, #tpu.memory_space<vmem>>, vector<1x1x512xf32>
    %27 = vector.shape_cast %26 : vector<1x1x512xf32> to vector<1x512xf32>
    %28 = vector.broadcast %27 : vector<1x512xf32> to vector<8x512xf32>
    %29 = arith.mulf %1, %28 : vector<8x512xf32>
    %30 = arith.truncf %29 : vector<8x512xf32> to vector<8x512xbf16>
    %c511_i32 = arith.constant 511 : i32
    %31 = tpu.dynamic_rotate %1 by %c511_i32 dim 1 : vector<8x512xf32>, i32 -> vector<8x512xf32>
    %c5 = arith.constant 5 : index
    %c0_14 = arith.constant 0 : index
    %c0_15 = arith.constant 0 : index
    %32 = vector.load %arg1[%c5, %c0_14, %c0_15] : memref<9x1x512xf32, #tpu.memory_space<vmem>>, vector<1x1x512xf32>
    %33 = vector.shape_cast %32 : vector<1x1x512xf32> to vector<1x512xf32>
    %34 = vector.broadcast %33 : vector<1x512xf32> to vector<8x512xf32>
    %35 = arith.mulf %31, %34 : vector<8x512xf32>
    %36 = arith.truncf %35 : vector<8x512xf32> to vector<8x512xbf16>
    %c497_i32 = arith.constant 497 : i32
    %37 = tpu.dynamic_rotate %1 by %c497_i32 dim 1 : vector<8x512xf32>, i32 -> vector<8x512xf32>
    %c6 = arith.constant 6 : index
    %c0_16 = arith.constant 0 : index
    %c0_17 = arith.constant 0 : index
    %38 = vector.load %arg1[%c6, %c0_16, %c0_17] : memref<9x1x512xf32, #tpu.memory_space<vmem>>, vector<1x1x512xf32>
    %39 = vector.shape_cast %38 : vector<1x1x512xf32> to vector<1x512xf32>
    %40 = vector.broadcast %39 : vector<1x512xf32> to vector<8x512xf32>
    %41 = arith.mulf %37, %40 : vector<8x512xf32>
    %42 = arith.truncf %41 : vector<8x512xf32> to vector<8x512xbf16>
    %c496_i32 = arith.constant 496 : i32
    %43 = tpu.dynamic_rotate %1 by %c496_i32 dim 1 : vector<8x512xf32>, i32 -> vector<8x512xf32>
    %c7 = arith.constant 7 : index
    %c0_18 = arith.constant 0 : index
    %c0_19 = arith.constant 0 : index
    %44 = vector.load %arg1[%c7, %c0_18, %c0_19] : memref<9x1x512xf32, #tpu.memory_space<vmem>>, vector<1x1x512xf32>
    %45 = vector.shape_cast %44 : vector<1x1x512xf32> to vector<1x512xf32>
    %46 = vector.broadcast %45 : vector<1x512xf32> to vector<8x512xf32>
    %47 = arith.mulf %43, %46 : vector<8x512xf32>
    %48 = arith.truncf %47 : vector<8x512xf32> to vector<8x512xbf16>
    %c495_i32 = arith.constant 495 : i32
    %49 = tpu.dynamic_rotate %1 by %c495_i32 dim 1 : vector<8x512xf32>, i32 -> vector<8x512xf32>
    %c8 = arith.constant 8 : index
    %c0_20 = arith.constant 0 : index
    %c0_21 = arith.constant 0 : index
    %50 = vector.load %arg1[%c8, %c0_20, %c0_21] : memref<9x1x512xf32, #tpu.memory_space<vmem>>, vector<1x1x512xf32>
    %51 = vector.shape_cast %50 : vector<1x1x512xf32> to vector<1x512xf32>
    %52 = vector.broadcast %51 : vector<1x512xf32> to vector<8x512xf32>
    %53 = arith.mulf %49, %52 : vector<8x512xf32>
    %54 = arith.truncf %53 : vector<8x512xf32> to vector<8x512xbf16>
    %55 = tpu.concatenate %7, %13, %19, %25, %30, %36, %42, %48, %54 in 0 : vector<8x512xbf16>, vector<8x512xbf16>, vector<8x512xbf16>, vector<8x512xbf16>, vector<8x512xbf16>, vector<8x512xbf16>, vector<8x512xbf16>, vector<8x512xbf16>, vector<8x512xbf16> -> vector<72x512xbf16>
    %cst = arith.constant dense<0.000000e+00> : vector<4x512xf32>
    %56 = tpu.matmul %0, %55, %cst {dimension_numbers = #tpu.dot_dimension_numbers<[1], [0], [0], [1], [0, 0, 1, 1], [], []>} : vector<4x72xbf16>, vector<72x512xbf16>, vector<4x512xf32> -> vector<4x512xf32>
    %cst_22 = arith.constant dense<0.000000e+00> : vector<4xf32>
    %57 = vector.multi_reduction <add>, %56, %cst_22 [1] : vector<4x512xf32> to vector<4xf32>
    %58 = vector.shape_cast %57 : vector<4xf32> to vector<4x1xf32>
    %cst_23 = arith.constant 5.120000e+02 : f32
    %59 = vector.broadcast %cst_23 : f32 to vector<4x1xf32>
    %60 = arith.divf %58, %59 : vector<4x1xf32>
    %61 = arith.mulf %56, %56 : vector<4x512xf32>
    %cst_24 = arith.constant dense<0.000000e+00> : vector<4xf32>
    %62 = vector.multi_reduction <add>, %61, %cst_24 [1] : vector<4x512xf32> to vector<4xf32>
    %63 = vector.shape_cast %62 : vector<4xf32> to vector<4x1xf32>
    %cst_25 = arith.constant 5.120000e+02 : f32
    %64 = vector.broadcast %cst_25 : f32 to vector<4x1xf32>
    %65 = arith.divf %63, %64 : vector<4x1xf32>
    %66 = arith.mulf %60, %60 : vector<4x1xf32>
    %67 = arith.subf %65, %66 : vector<4x1xf32>
    %c0_26 = arith.constant 0 : index
    %c0_27 = arith.constant 0 : index
    %68 = vector.load %arg3[%c0_26, %c0_27] : memref<4x1xf32, #tpu.memory_space<vmem>>, vector<4x1xf32>
    %cst_28 = arith.constant 9.99999974E-6 : f32
    %69 = vector.broadcast %cst_28 : f32 to vector<4x1xf32>
    %70 = arith.addf %67, %69 : vector<4x1xf32>
    %71 = math.rsqrt %70 : vector<4x1xf32>
    %72 = arith.mulf %68, %71 : vector<4x1xf32>
    %c0_29 = arith.constant 0 : index
    %c0_30 = arith.constant 0 : index
    %73 = vector.load %arg4[%c0_29, %c0_30] : memref<4x1xf32, #tpu.memory_space<vmem>>, vector<4x1xf32>
    %74 = arith.mulf %60, %72 : vector<4x1xf32>
    %75 = arith.subf %73, %74 : vector<4x1xf32>
    %76 = vector.broadcast %72 : vector<4x1xf32> to vector<4x512xf32>
    %77 = arith.mulf %56, %76 : vector<4x512xf32>
    %78 = vector.broadcast %75 : vector<4x1xf32> to vector<4x512xf32>
    %79 = arith.addf %77, %78 : vector<4x512xf32>
    %cst_31 = arith.constant 0.000000e+00 : f32
    %80 = vector.broadcast %cst_31 : f32 to vector<4x512xf32>
    %81 = arith.maximumf %79, %80 : vector<4x512xf32>
    %c0_32 = arith.constant 0 : index
    %c0_33 = arith.constant 0 : index
    %82 = vector.load %arg5[%c0_32, %c0_33] : memref<4x36xbf16, #tpu.memory_space<vmem>>, vector<4x36xbf16>
    %c17_i32_34 = arith.constant 17 : i32
    %83 = tpu.dynamic_rotate %81 by %c17_i32_34 dim 1 : vector<4x512xf32>, i32 -> vector<4x512xf32>
    %c0_35 = arith.constant 0 : index
    %c0_36 = arith.constant 0 : index
    %c0_37 = arith.constant 0 : index
    %84 = vector.load %arg1[%c0_35, %c0_36, %c0_37] : memref<9x1x512xf32, #tpu.memory_space<vmem>>, vector<1x1x512xf32>
    %85 = vector.shape_cast %84 : vector<1x1x512xf32> to vector<1x512xf32>
    %86 = vector.broadcast %85 : vector<1x512xf32> to vector<4x512xf32>
    %87 = arith.mulf %83, %86 : vector<4x512xf32>
    %88 = arith.truncf %87 : vector<4x512xf32> to vector<4x512xbf16>
    %c16_i32_38 = arith.constant 16 : i32
    %89 = tpu.dynamic_rotate %81 by %c16_i32_38 dim 1 : vector<4x512xf32>, i32 -> vector<4x512xf32>
    %c1_39 = arith.constant 1 : index
    %c0_40 = arith.constant 0 : index
    %c0_41 = arith.constant 0 : index
    %90 = vector.load %arg1[%c1_39, %c0_40, %c0_41] : memref<9x1x512xf32, #tpu.memory_space<vmem>>, vector<1x1x512xf32>
    %91 = vector.shape_cast %90 : vector<1x1x512xf32> to vector<1x512xf32>
    %92 = vector.broadcast %91 : vector<1x512xf32> to vector<4x512xf32>
    %93 = arith.mulf %89, %92 : vector<4x512xf32>
    %94 = arith.truncf %93 : vector<4x512xf32> to vector<4x512xbf16>
    %c15_i32_42 = arith.constant 15 : i32
    %95 = tpu.dynamic_rotate %81 by %c15_i32_42 dim 1 : vector<4x512xf32>, i32 -> vector<4x512xf32>
    %c2_43 = arith.constant 2 : index
    %c0_44 = arith.constant 0 : index
    %c0_45 = arith.constant 0 : index
    %96 = vector.load %arg1[%c2_43, %c0_44, %c0_45] : memref<9x1x512xf32, #tpu.memory_space<vmem>>, vector<1x1x512xf32>
    %97 = vector.shape_cast %96 : vector<1x1x512xf32> to vector<1x512xf32>
    %98 = vector.broadcast %97 : vector<1x512xf32> to vector<4x512xf32>
    %99 = arith.mulf %95, %98 : vector<4x512xf32>
    %100 = arith.truncf %99 : vector<4x512xf32> to vector<4x512xbf16>
    %c1_i32_46 = arith.constant 1 : i32
    %101 = tpu.dynamic_rotate %81 by %c1_i32_46 dim 1 : vector<4x512xf32>, i32 -> vector<4x512xf32>
    %c3_47 = arith.constant 3 : index
    %c0_48 = arith.constant 0 : index
    %c0_49 = arith.constant 0 : index
    %102 = vector.load %arg1[%c3_47, %c0_48, %c0_49] : memref<9x1x512xf32, #tpu.memory_space<vmem>>, vector<1x1x512xf32>
    %103 = vector.shape_cast %102 : vector<1x1x512xf32> to vector<1x512xf32>
    %104 = vector.broadcast %103 : vector<1x512xf32> to vector<4x512xf32>
    %105 = arith.mulf %101, %104 : vector<4x512xf32>
    %106 = arith.truncf %105 : vector<4x512xf32> to vector<4x512xbf16>
    %c4_50 = arith.constant 4 : index
    %c0_51 = arith.constant 0 : index
    %c0_52 = arith.constant 0 : index
    %107 = vector.load %arg1[%c4_50, %c0_51, %c0_52] : memref<9x1x512xf32, #tpu.memory_space<vmem>>, vector<1x1x512xf32>
    %108 = vector.shape_cast %107 : vector<1x1x512xf32> to vector<1x512xf32>
    %109 = vector.broadcast %108 : vector<1x512xf32> to vector<4x512xf32>
    %110 = arith.mulf %81, %109 : vector<4x512xf32>
    %111 = arith.truncf %110 : vector<4x512xf32> to vector<4x512xbf16>
    %c511_i32_53 = arith.constant 511 : i32
    %112 = tpu.dynamic_rotate %81 by %c511_i32_53 dim 1 : vector<4x512xf32>, i32 -> vector<4x512xf32>
    %c5_54 = arith.constant 5 : index
    %c0_55 = arith.constant 0 : index
    %c0_56 = arith.constant 0 : index
    %113 = vector.load %arg1[%c5_54, %c0_55, %c0_56] : memref<9x1x512xf32, #tpu.memory_space<vmem>>, vector<1x1x512xf32>
    %114 = vector.shape_cast %113 : vector<1x1x512xf32> to vector<1x512xf32>
    %115 = vector.broadcast %114 : vector<1x512xf32> to vector<4x512xf32>
    %116 = arith.mulf %112, %115 : vector<4x512xf32>
    %117 = arith.truncf %116 : vector<4x512xf32> to vector<4x512xbf16>
    %c497_i32_57 = arith.constant 497 : i32
    %118 = tpu.dynamic_rotate %81 by %c497_i32_57 dim 1 : vector<4x512xf32>, i32 -> vector<4x512xf32>
    %c6_58 = arith.constant 6 : index
    %c0_59 = arith.constant 0 : index
    %c0_60 = arith.constant 0 : index
    %119 = vector.load %arg1[%c6_58, %c0_59, %c0_60] : memref<9x1x512xf32, #tpu.memory_space<vmem>>, vector<1x1x512xf32>
    %120 = vector.shape_cast %119 : vector<1x1x512xf32> to vector<1x512xf32>
    %121 = vector.broadcast %120 : vector<1x512xf32> to vector<4x512xf32>
    %122 = arith.mulf %118, %121 : vector<4x512xf32>
    %123 = arith.truncf %122 : vector<4x512xf32> to vector<4x512xbf16>
    %c496_i32_61 = arith.constant 496 : i32
    %124 = tpu.dynamic_rotate %81 by %c496_i32_61 dim 1 : vector<4x512xf32>, i32 -> vector<4x512xf32>
    %c7_62 = arith.constant 7 : index
    %c0_63 = arith.constant 0 : index
    %c0_64 = arith.constant 0 : index
    %125 = vector.load %arg1[%c7_62, %c0_63, %c0_64] : memref<9x1x512xf32, #tpu.memory_space<vmem>>, vector<1x1x512xf32>
    %126 = vector.shape_cast %125 : vector<1x1x512xf32> to vector<1x512xf32>
    %127 = vector.broadcast %126 : vector<1x512xf32> to vector<4x512xf32>
    %128 = arith.mulf %124, %127 : vector<4x512xf32>
    %129 = arith.truncf %128 : vector<4x512xf32> to vector<4x512xbf16>
    %c495_i32_65 = arith.constant 495 : i32
    %130 = tpu.dynamic_rotate %81 by %c495_i32_65 dim 1 : vector<4x512xf32>, i32 -> vector<4x512xf32>
    %c8_66 = arith.constant 8 : index
    %c0_67 = arith.constant 0 : index
    %c0_68 = arith.constant 0 : index
    %131 = vector.load %arg1[%c8_66, %c0_67, %c0_68] : memref<9x1x512xf32, #tpu.memory_space<vmem>>, vector<1x1x512xf32>
    %132 = vector.shape_cast %131 : vector<1x1x512xf32> to vector<1x512xf32>
    %133 = vector.broadcast %132 : vector<1x512xf32> to vector<4x512xf32>
    %134 = arith.mulf %130, %133 : vector<4x512xf32>
    %135 = arith.truncf %134 : vector<4x512xf32> to vector<4x512xbf16>
    %136 = tpu.concatenate %88, %94, %100, %106, %111, %117, %123, %129, %135 in 0 : vector<4x512xbf16>, vector<4x512xbf16>, vector<4x512xbf16>, vector<4x512xbf16>, vector<4x512xbf16>, vector<4x512xbf16>, vector<4x512xbf16>, vector<4x512xbf16>, vector<4x512xbf16> -> vector<36x512xbf16>
    %cst_69 = arith.constant dense<0.000000e+00> : vector<4x512xf32>
    %137 = tpu.matmul %82, %136, %cst_69 {dimension_numbers = #tpu.dot_dimension_numbers<[1], [0], [0], [1], [0, 0, 1, 1], [], []>} : vector<4x36xbf16>, vector<36x512xbf16>, vector<4x512xf32> -> vector<4x512xf32>
    %cst_70 = arith.constant dense<0.000000e+00> : vector<4xf32>
    %138 = vector.multi_reduction <add>, %137, %cst_70 [1] : vector<4x512xf32> to vector<4xf32>
    %139 = vector.shape_cast %138 : vector<4xf32> to vector<4x1xf32>
    %cst_71 = arith.constant 5.120000e+02 : f32
    %140 = vector.broadcast %cst_71 : f32 to vector<4x1xf32>
    %141 = arith.divf %139, %140 : vector<4x1xf32>
    %142 = arith.mulf %137, %137 : vector<4x512xf32>
    %cst_72 = arith.constant dense<0.000000e+00> : vector<4xf32>
    %143 = vector.multi_reduction <add>, %142, %cst_72 [1] : vector<4x512xf32> to vector<4xf32>
    %144 = vector.shape_cast %143 : vector<4xf32> to vector<4x1xf32>
    %cst_73 = arith.constant 5.120000e+02 : f32
    %145 = vector.broadcast %cst_73 : f32 to vector<4x1xf32>
    %146 = arith.divf %144, %145 : vector<4x1xf32>
    %147 = arith.mulf %141, %141 : vector<4x1xf32>
    %148 = arith.subf %146, %147 : vector<4x1xf32>
    %c0_74 = arith.constant 0 : index
    %c0_75 = arith.constant 0 : index
    %149 = vector.load %arg6[%c0_74, %c0_75] : memref<4x1xf32, #tpu.memory_space<vmem>>, vector<4x1xf32>
    %cst_76 = arith.constant 9.99999974E-6 : f32
    %150 = vector.broadcast %cst_76 : f32 to vector<4x1xf32>
    %151 = arith.addf %148, %150 : vector<4x1xf32>
    %152 = math.rsqrt %151 : vector<4x1xf32>
    %153 = arith.mulf %149, %152 : vector<4x1xf32>
    %c0_77 = arith.constant 0 : index
    %c0_78 = arith.constant 0 : index
    %154 = vector.load %arg7[%c0_77, %c0_78] : memref<4x1xf32, #tpu.memory_space<vmem>>, vector<4x1xf32>
    %155 = arith.mulf %141, %153 : vector<4x1xf32>
    %156 = arith.subf %154, %155 : vector<4x1xf32>
    %157 = vector.broadcast %153 : vector<4x1xf32> to vector<4x512xf32>
    %158 = arith.mulf %137, %157 : vector<4x512xf32>
    %159 = vector.broadcast %156 : vector<4x1xf32> to vector<4x512xf32>
    %160 = arith.addf %158, %159 : vector<4x512xf32>
    %cst_79 = arith.constant 0.000000e+00 : f32
    %161 = vector.broadcast %cst_79 : f32 to vector<4x512xf32>
    %162 = arith.maximumf %160, %161 : vector<4x512xf32>
    %c0_80 = arith.constant 0 : index
    %c0_81 = arith.constant 0 : index
    %163 = vector.load %arg8[%c0_80, %c0_81] : memref<4x512xf32, #tpu.memory_space<vmem>>, vector<4x512xf32>
    tpu.vector_store %arg8[%c0_80, %c0_81], %162 {strides = array<i32>} : memref<4x512xf32, #tpu.memory_space<vmem>>, vector<4x512xf32>,
    return
  }
}

</mosaic_0001>

<bundles_post_ra>
// kernel: up_forward.1
= control target key start
LH: loop header
LB: loop body
LE: loop exit
PB: predicated region body
PF: predicated region fallthrough
CT: control target
= control target key end

     0   :  { %s1151_s9 = smov 16   ;;  %s1152_s12 = smov 17   ;;  %v1158_v4 = vmov 0   ;;  %v43_v5 = vlaneseq  ;;  %vm451_vm2 = vcmask 1043456   ;;  %vm516_vm9 = vcmask 588800   ;;  %s1850_s0 = inlined_call_operand.vmem [shape: f32[8,512], index: 0, kind: input, shape index: {}]   ;;  %s1851_s1 = inlined_call_operand.vmem [shape: f32[9,1,512], index: 1, kind: input, shape index: {}]   ;;  %s1852_s2 = inlined_call_operand.vmem [shape: bf16[4,72], index: 2, kind: input, shape index: {}]   ;;  %s1853_s3 = inlined_call_operand.vmem [shape: f32[4,1], index: 3, kind: input, shape index: {}]   ;;  %s1854_s4 = inlined_call_operand.vmem [shape: f32[4,1], index: 4, kind: input, shape index: {}]   ;;  %s1855_s5 = inlined_call_operand.vmem [shape: bf16[4,36], index: 5, kind: input, shape index: {}]   ;;  %s1856_s6 = inlined_call_operand.vmem [shape: f32[4,1], index: 6, kind: input, shape index: {}]   ;;  %s1857_s7 = inlined_call_operand.vmem [shape: f32[4,1], index: 7, kind: input, shape index: {}]   ;;  %s1858_s8 = inlined_call_operand.vmem [shape: f32[4,512], index: 8, kind: output, shape index: {}]  }
   0x1   :  { %v1208_v0 = vld [vmem:[%s1850_s0 + $0x18] sm:$0xff]  ;;  %v1213_v1 = vld [vmem:[%s1850_s0] sm:$0xff]  ;;  %v1222_v2 = vld [vmem:[%s1850_s0 + $0x8] sm:$0xff]  ;;  %s1153_s15 = smov 1   ;;  %s1154_s16 = smov 15   ;;  %564 = vmatprep.mubr.bf16.mxu0 %v1158_v4  ;;  %605 = vmatprep.mubr.bf16.mxu1 %v1158_v4  ;;  %vm887_vm10 = vcmask 1041408  }
   0x2   :  { %86 = vrot.lane.b32.xlu1 %v1208_v0, %s1151_s9  ;;  %80 = vrot.lane.b32.xlu0 %v1213_v1, %s1151_s9  ;;  %v1235_v3 = vld [vmem:[%s1850_s0 + $0x10] sm:$0xff]  ;;  %s1155_s0 = smov 127   ;;  %s1156_s17 = smov 112   ;;  %v53_v6 = vshrl.u32 %v43_v5, 7  ;;  %v1293_v7 = vand.u32 127, %v43_v5  ;;  %vm908_vm11 = vcmask 1045504  }
   0x3   :  { %s1157_s18 = smov 113   ;;  %1145 = vset.pattern.permute.xlu0 %v1158_v4  ;;  %1146 = vset.pattern.permute.xlu1 %v1158_v4  ;;  %s1159_s19 = smov 111   ;;  %v1120_v9 = vld [vmem:[%s1851_s1 + $0x4] sm:$0xf]  ;;  %v50_v16 = vld [vmem:[%s1851_s1] sm:$0xf] }
   0x4   :  { %v1295_v8 = vsub.s32 0, %v53_v6  ;;  %vm88_vm0 = vcmp.lt.s32.totalorder %v1293_v7, 16  ;;  %v1301_v10 = vsub.s32 1, %v53_v6  ;;  %vm45_vm1 = vcmp.lt.s32.totalorder %v1293_v7, 17  ;;  %v1122_v46 = vld [vmem:[%s1851_s1 + $0xc] sm:$0xf] }
   0x5   :  { %v1318_v21 = vsub.s32 2, %v53_v6  ;;  %v1327_v25 = vsub.s32 3, %v53_v6  ;;  %vm176_vm3 = vcmp.lt.s32.totalorder %v1293_v7, 1  ;;  %v1121_v62 = vld [vmem:[%s1851_s1 + $0x8] sm:$0xf]  ;;  %vm132_vm4 = vcmp.lt.s32.totalorder %v1293_v7, 15 }
   0x6   :  { %35 = vrot.lane.b32.xlu1 %v1213_v1, %s1152_s12  ;;  %82 = vrot.lane.b32.xlu0 %v1222_v2, %s1151_s9  ;;  %v1304_v12 = vrot.slane %v1120_v9, %v1295_v8  ;;  %v1309_v15 = vrot.slane %v1120_v9, %v1301_v10  ;;  %v1322_v23 = vrot.slane %v50_v16, %v1295_v8  ;;  %vm251_vm5 = vcmp.lt.s32.totalorder %v1293_v7, 127 }
   0x7   :  { %v1325_v24 = vrot.slane %v50_v16, %v1301_v10  ;;  %v1336_v34 = vrot.slane %v1120_v9, %v1318_v21  ;;  %v1339_v35 = vrot.slane %v1120_v9, %v1327_v25  ;;  %v1347_v44 = vrot.slane %v50_v16, %v1318_v21 }
   0x8   :  { %v1350_v45 = vrot.slane %v50_v16, %v1327_v25  ;;  %v1360_v54 = vrot.slane %v1122_v46, %v1301_v10  ;;  %v1371_v61 = vrot.slane %v1122_v46, %v1295_v8  ;;  %vm339_vm6 = vcmp.lt.s32.totalorder %v1293_v7, 112 }
   0x9   :  { %vm295_vm7 = vcmp.lt.s32.totalorder %v1293_v7, 113  ;;  %vm383_vm8 = vcmp.lt.s32.totalorder %v1293_v7, 111  ;;  %vm953_vm12 = vcmask 293888  }
   0xa   :  { %41 = vrot.lane.b32.xlu1 %v1208_v0, %s1152_s12  ;;  %37 = vrot.lane.b32.xlu0 %v1222_v2, %s1152_s12 }
   0xe   :  { %168 = vrot.lane.b32.xlu1 %v1213_v1, %s1153_s15  ;;  %84 = vrot.lane.b32.xlu0 %v1235_v3, %s1151_s9 }
  0x12   :  { %39 = vrot.lane.b32.xlu1 %v1235_v3, %s1152_s12  ;;  %170 = vrot.lane.b32.xlu0 %v1222_v2, %s1153_s15 }
  0x16   :  { %124 = vrot.lane.b32.xlu1 %v1213_v1, %s1154_s16  ;;  %174 = vrot.lane.b32.xlu0 %v1208_v0, %s1153_s15 }
  0x1a   :  { %130 = vrot.lane.b32.xlu1 %v1208_v0, %s1154_s16  ;;  %126 = vrot.lane.b32.xlu0 %v1222_v2, %s1154_s16 }
  0x1e   :  { %245 = vrot.lane.b32.xlu1 %v1222_v2, %s1155_s0  ;;  %172 = vrot.lane.b32.xlu0 %v1235_v3, %s1153_s15 }
  0x22   :  { %128 = vrot.lane.b32.xlu1 %v1235_v3, %s1154_s16  ;;  %247 = vrot.lane.b32.xlu0 %v1235_v3, %s1155_s0 }
  0x26   :  { %249 = vrot.lane.b32.xlu1 %v1208_v0, %s1155_s0  ;;  %243 = vrot.lane.b32.xlu0 %v1213_v1, %s1155_s0 }
  0x2a   :  { %335 = vrot.lane.b32.xlu1 %v1235_v3, %s1156_s17  ;;  %333 = vrot.lane.b32.xlu0 %v1222_v2, %s1156_s17 }
  0x2e   :  { %289 = vrot.lane.b32.xlu1 %v1222_v2, %s1157_s18  ;;  %331 = vrot.lane.b32.xlu0 %v1213_v1, %s1156_s17 }
  0x32   :  { %287 = vrot.lane.b32.xlu1 %v1213_v1, %s1157_s18  ;;  %291 = vrot.lane.b32.xlu0 %v1235_v3, %s1157_s18 }
  0x36   :  { %293 = vrot.lane.b32.xlu1 %v1208_v0, %s1157_s18  ;;  %337 = vrot.lane.b32.xlu0 %v1208_v0, %s1156_s17 }
  0x3a   :  { %377 = vrot.lane.b32.xlu1 %v1222_v2, %s1159_s19  ;;  %375 = vrot.lane.b32.xlu0 %v1213_v1, %s1159_s19 }
  0x3e   :  { %381 = vrot.lane.b32.xlu1 %v1208_v0, %s1159_s19  ;;  %379 = vrot.lane.b32.xlu0 %v1235_v3, %s1159_s19 }
  0x74   :  { %v87_v11 = vpop.permute.xlu1 %86  ;;  %v81_v13 = vpop.permute.xlu0 %80 }
  0x75   :  { %v92_v14 = vsel %vm88_vm0, %v87_v11, %v81_v13 }
  0x76   :  { %v116_v17 = vmul.f32 %v1304_v12, %v92_v14 }
  0x78   :  { %v36_v18 = vpop.permute.xlu1 %35  ;;  %v83_v19 = vpop.permute.xlu0 %82  ;;  %v120_v26 = vpack.c.bf16 %v116_v17, %v116_v17  ;;  %v1381_v17 = vrot.slane %v1121_v62, %v1295_v8 }
  0x79   :  { %v91_v20 = vsel %vm88_vm0, %v81_v13, %v83_v19 }
  0x7a   :  { %v117_v22 = vmul.f32 %v1309_v15, %v91_v20  ;;  %v423_v36 = vrot.slane %v120_v26, 4  ;;  %v1123_v26 = vld [vmem:[%s1851_s1 + $0x10] sm:$0xf] }
  0x7c   :  { %v121_v27 = vpack.c.bf16 %v117_v22, %v117_v22  ;;  %v42_v28 = vpop.permute.xlu1 %41  ;;  %v38_v29 = vpop.permute.xlu0 %37  ;;  %v1387_v22 = vrot.slane %v1121_v62, %v1301_v10 }
  0x7d   :  { %v49_v30 = vsel %vm45_vm1, %v42_v28, %v36_v18  ;;  %v48_v31 = vsel %vm45_vm1, %v36_v18, %v38_v29 }
  0x7e   :  { %v72_v32 = vmul.f32 %v1322_v23, %v49_v30  ;;  %v73_v33 = vmul.f32 %v1325_v24, %v48_v31  ;;  %v424_v37 = vrot.slane %v121_v27, 4 }
  0x80   :  { %v76_v38 = vpack.c.bf16 %v72_v32, %v72_v32  ;;  %v77_v39 = vpack.c.bf16 %v73_v33, %v73_v33  ;;  %v169_v40 = vpop.permute.xlu1 %168  ;;  %v85_v41 = vpop.permute.xlu0 %84  ;;  %v1397_v33 = vrot.slane %v1123_v26, %v1301_v10 }
  0x81   :  { %v89_v42 = vsel %vm88_vm0, %v85_v41, %v87_v11  ;;  %v90_v43 = vsel %vm88_vm0, %v83_v19, %v85_v41  ;;  %v1411_v41 = vrot.slane %v1121_v62, %v1318_v21 }
  0x82   :  { %v118_v47 = vmul.f32 %v1336_v34, %v90_v43  ;;  %v119_v48 = vmul.f32 %v1339_v35, %v89_v42  ;;  %v458_v49 = vsel %vm451_vm2, %v77_v39, %v424_v37  ;;  %v454_v50 = vsel %vm451_vm2, %v76_v38, %v423_v36 }
  0x83   :  { %532 = vmatprep.subr.bf16.mxu0 %v458_v49  ;;  %v1402_v38 = vrot.slane %v1122_v46, %v1318_v21  ;;  %v1405_v39 = vrot.slane %v1122_v46, %v1327_v25  ;;  %v1414_v42 = vrot.slane %v1121_v62, %v1327_v25 }
  0x84   :  { %v122_v51 = vpack.c.bf16 %v118_v47, %v118_v47  ;;  %v123_v52 = vpack.c.bf16 %v119_v48, %v119_v48  ;;  %v40_v53 = vpop.permute.xlu1 %39  ;;  %533 = vmatpush1.bf16.msra.mxu0 %v454_v50  ;;  %v171_v55 = vpop.permute.xlu0 %170 }
  0x85   :  { %v46_v56 = vsel %vm45_vm1, %v40_v53, %v42_v28  ;;  %v47_v57 = vsel %vm45_vm1, %v38_v29, %v40_v53  ;;  %v179_v58 = vsel %vm176_vm3, %v169_v40, %v171_v55 }
  0x86   :  { %v74_v59 = vmul.f32 %v1347_v44, %v47_v57  ;;  %v75_v60 = vmul.f32 %v1350_v45, %v46_v56  ;;  %v425_v63 = vrot.slane %v122_v51, 4  ;;  %v426_v5 = vrot.slane %v123_v52, 4 }
  0x87   :  { %v205_v11 = vmul.f32 %v1360_v54, %v179_v58  ;;  %v236_v56 = vmul.f32 %v1397_v33, %v1222_v2  ;;  %v1442_v2 = vrot.slane %v1123_v26, %v1327_v25 }
  0x88   :  { %v78_v6 = vpack.c.bf16 %v74_v59, %v74_v59  ;;  %v79_v9 = vpack.c.bf16 %v75_v60, %v75_v60  ;;  %v125_v13 = vpop.permute.xlu1 %124  ;;  %v175_v14 = vpop.permute.xlu0 %174 }
  0x89   :  { %v180_v16 = vsel %vm176_vm3, %v175_v14, %v169_v40  ;;  %v209_v27 = vpack.c.bf16 %v205_v11, %v205_v11  ;;  %v1124_v40 = vld [vmem:[%s1851_s1 + $0x14] sm:$0xf] }
  0x8a   :  { %v204_v18 = vmul.f32 %v1371_v61, %v180_v16  ;;  %v466_v19 = vsel %vm451_vm2, %v79_v9, %v426_v5  ;;  %v462_v20 = vsel %vm451_vm2, %v78_v6, %v425_v63  ;;  %v1422_v53 = vrot.slane %v1124_v40, %v1301_v10 }
  0x8b   :  { %573 = vmatprep.subr.bf16.mxu1 %v466_v19  ;;  %v432_v43 = vrot.slane %v209_v27, 4  ;;  %v1431_v62 = vrot.slane %v1124_v40, %v1318_v21  ;;  %v1439_v63 = vrot.slane %v1123_v26, %v1295_v8  ;;  %v1445_v5 = vrot.slane %v1123_v26, %v1318_v21 }
  0x8c   :  { %v208_v28 = vpack.c.bf16 %v204_v18, %v204_v18  ;;  %v131_v29 = vpop.permute.xlu1 %130  ;;  %574 = vmatpush1.bf16.msra.mxu1 %v462_v20  ;;  %v127_v30 = vpop.permute.xlu0 %126  ;;  %v1451_v16 = vrot.slane %v1124_v40, %v1327_v25  ;;  %v240_v26 = vpack.c.bf16 %v236_v56, %v236_v56 }
  0x8d   :  { %v136_v31 = vsel %vm132_vm4, %v131_v29, %v125_v13  ;;  %v135_v32 = vsel %vm132_vm4, %v125_v13, %v127_v30 }
  0x8e   :  { %v160_v36 = vmul.f32 %v1381_v17, %v136_v31  ;;  %v161_v37 = vmul.f32 %v1387_v22, %v135_v32  ;;  %v431_v47 = vrot.slane %v208_v28, 4 }
  0x90   :  { %v164_v48 = vpack.c.bf16 %v160_v36, %v160_v36  ;;  %v165_v49 = vpack.c.bf16 %v161_v37, %v161_v37  ;;  %v246_v50 = vpop.permute.xlu1 %245  ;;  %v173_v51 = vpop.permute.xlu0 %172  ;;  %v237_v36 = vmul.f32 %v1445_v5, %v1235_v3 }
  0x91   :  { %v177_v46 = vsel %vm176_vm3, %v173_v51, %v175_v14  ;;  %v178_v52 = vsel %vm176_vm3, %v171_v55, %v173_v51  ;;  %v1436_v55 = vld [vmem:[%s1851_s1 + $0x1c] sm:$0xf]  ;;  %v1448_v14 = vrot.slane %v1124_v40, %v1295_v8 }
  0x92   :  { %v206_v57 = vmul.f32 %v1402_v38, %v178_v52  ;;  %v207_v58 = vmul.f32 %v1405_v39, %v177_v46  ;;  %v474_v59 = vsel %vm451_vm2, %v165_v49, %v432_v43  ;;  %v470_v60 = vsel %vm451_vm2, %v164_v48, %v431_v47 }
  0x93   :  { %534 = vmatprep.subr.bf16.mxu0 %v474_v59  ;;  %v1464_v31 = vrot.slane %v1436_v55, %v1301_v10 }
  0x94   :  { %v210_v6 = vpack.c.bf16 %v206_v57, %v206_v57  ;;  %v211_v9 = vpack.c.bf16 %v207_v58, %v207_v58  ;;  %v129_v11 = vpop.permute.xlu1 %128  ;;  %535 = vmatpush1.bf16.msra.mxu0 %v470_v60  ;;  %v248_v13 = vpop.permute.xlu0 %247 }
  0x95   :  { %v133_v18 = vsel %vm132_vm4, %v129_v11, %v131_v29  ;;  %v134_v19 = vsel %vm132_vm4, %v127_v30, %v129_v11  ;;  %v253_v20 = vsel %vm251_vm5, %v246_v50, %v248_v13  ;;  %v235_v29 = vmul.f32 %v1439_v63, %v1213_v1 }
  0x96   :  { %v162_v27 = vmul.f32 %v1411_v41, %v134_v19  ;;  %v163_v28 = vmul.f32 %v1414_v42, %v133_v18  ;;  %v280_v32 = vmul.f32 %v1422_v53, %v253_v20  ;;  %v238_v30 = vmul.f32 %v1442_v2, %v1208_v0 }
  0x97   :  { %v433_v37 = vrot.slane %v210_v6, 4  ;;  %v434_v40 = vrot.slane %v211_v9, 4  ;;  %v239_v60 = vpack.c.bf16 %v235_v29, %v235_v29  ;;  %v241_v19 = vpack.c.bf16 %v237_v36, %v237_v36 }
  0x98   :  { %v166_v43 = vpack.c.bf16 %v162_v27, %v162_v27  ;;  %v167_v47 = vpack.c.bf16 %v163_v28, %v163_v28  ;;  %v250_v48 = vpop.permute.xlu1 %249  ;;  %v244_v49 = vpop.permute.xlu0 %243  ;;  %v284_v51 = vpack.c.bf16 %v280_v32, %v280_v32  ;;  %v242_v6 = vpack.c.bf16 %v238_v30, %v238_v30  ;;  %v1125_v30 = vld [vmem:[%s1851_s1 + $0x18] sm:$0xf] }
  0x99   :  { %v252_v46 = vsel %vm251_vm5, %v248_v13, %v250_v48  ;;  %v254_v52 = vsel %vm251_vm5, %v244_v49, %v246_v50  ;;  %v255_v1 = vsel %vm251_vm5, %v250_v48, %v244_v49  ;;  %v1489_v29 = vrot.slane %v1436_v55, %v1295_v8 }
  0x9a   :  { %v281_v0 = vmul.f32 %v1431_v62, %v252_v46  ;;  %v279_v3 = vmul.f32 %v1448_v14, %v254_v52  ;;  %v282_v56 = vmul.f32 %v1451_v16, %v255_v1  ;;  %v482_v57 = vsel %vm451_vm2, %v167_v47, %v434_v40 }
  0x9b   :  { %v440_v58 = vrot.slane %v284_v51, 4  ;;  %575 = vmatprep.subr.bf16.mxu1 %v482_v57  ;;  %v478_v59 = vsel %vm451_vm2, %v166_v43, %v433_v37  ;;  %v1503_v46 = vrot.slane %v1125_v30, %v1295_v8  ;;  %v1506_v52 = vrot.slane %v1125_v30, %v1301_v10  ;;  %v1127_v57 = vld [vmem:[%s1851_s1 + $0x20] sm:$0xf] }
  0x9c   :  { %v285_v9 = vpack.c.bf16 %v281_v0, %v281_v0  ;;  %v283_v11 = vpack.c.bf16 %v279_v3, %v279_v3  ;;  %v286_v50 = vpack.c.bf16 %v282_v56, %v282_v56  ;;  %v336_v13 = vpop.permute.xlu1 %335  ;;  %576 = vmatpush1.bf16.msra.mxu1 %v478_v59  ;;  %v334_v18 = vpop.permute.xlu0 %333 }
  0x9d   :  { %v341_v20 = vsel %vm339_vm6, %v334_v18, %v336_v13  ;;  %v490_v27 = vsel %vm451_vm2, %v240_v26, %v440_v58 }
  0x9e   :  { %v441_v28 = vrot.slane %v285_v9, 4  ;;  %v439_v32 = vrot.slane %v283_v11, 4  ;;  %v442_v40 = vrot.slane %v286_v50, 4  ;;  %536 = vmatprep.subr.bf16.mxu0 %v490_v27  ;;  %v368_v37 = vmul.f32 %v1464_v31, %v341_v20 }
  0x9f   :  { %v1525_v50 = vrot.slane %v1436_v55, %v1318_v21 }
  0xa0   :  { %v290_v36 = vpop.permute.xlu1 %289  ;;  %v332_v43 = vpop.permute.xlu0 %331  ;;  %v486_v47 = vsel %vm451_vm2, %v239_v60, %v439_v32  ;;  %v498_v26 = vsel %vm451_vm2, %v242_v6, %v442_v40  ;;  %v494_v48 = vsel %vm451_vm2, %v241_v19, %v441_v28  ;;  %v372_v1 = vpack.c.bf16 %v368_v37, %v368_v37 }
  0xa1   :  { %v342_v49 = vsel %vm339_vm6, %v332_v43, %v334_v18  ;;  %537 = vmatpush1.bf16.msra.mxu0 %v486_v47  ;;  %577 = vmatprep.subr.bf16.mxu1 %v498_v26  ;;  %v1516_v60 = vrot.slane %v1125_v30, %v1318_v21  ;;  %v1519_v6 = vrot.slane %v1125_v30, %v1327_v25 }
  0xa2   :  { %v367_v51 = vmul.f32 %v1489_v29, %v342_v49  ;;  %578 = vmatpush1.bf16.msra.mxu1 %v494_v48  ;;  %v1529_v18 = vrot.slane %v1436_v55, %v1327_v25  ;;  %v1533_v19 = vrot.slane %v1127_v57, %v1295_v8  ;;  %v448_v20 = vrot.slane %v372_v1, 4 }
  0xa4   :  { %v371_v0 = vpack.c.bf16 %v367_v51, %v367_v51  ;;  %v288_v3 = vpop.permute.xlu1 %287  ;;  %v292_v56 = vpop.permute.xlu0 %291  ;;  %1863 = vst [vmem:[#allocation2_spill] sm:$0xff] %v1533_v19 }
  0xa5   :  { %v298_v58 = vsel %vm295_vm7, %v288_v3, %v290_v36  ;;  %v297_v59 = vsel %vm295_vm7, %v290_v36, %v292_v56 }
  0xa6   :  { %v323_v9 = vmul.f32 %v1503_v46, %v298_v58  ;;  %v324_v11 = vmul.f32 %v1506_v52, %v297_v59  ;;  %v447_v27 = vrot.slane %v371_v0, 4  ;;  %v1550_v58 = vrot.slane %v1127_v57, %v1327_v25 }
  0xa8   :  { %v327_v28 = vpack.c.bf16 %v323_v9, %v323_v9  ;;  %v328_v32 = vpack.c.bf16 %v324_v11, %v324_v11  ;;  %v294_v40 = vpop.permute.xlu1 %293  ;;  %v338_v30 = vpop.permute.xlu0 %337  ;;  %1864 = vst [vmem:[#allocation3_spill] sm:$0xff] %v1550_v58  ;;  %v1555_v9 = vrot.slane %v1127_v57, %v1301_v10  ;;  %v1558_v11 = vrot.slane %v1127_v57, %v1318_v21 }
  0xa9   :  { %v296_v37 = vsel %vm295_vm7, %v292_v56, %v294_v40  ;;  %v299_v36 = vsel %vm295_vm7, %v294_v40, %v288_v3  ;;  %v340_v55 = vsel %vm339_vm6, %v336_v13, %v338_v30  ;;  %v343_v47 = vsel %vm339_vm6, %v338_v30, %v332_v43 }
  0xaa   :  { %v325_v8 = vmul.f32 %v1516_v60, %v296_v37  ;;  %v326_v26 = vmul.f32 %v1519_v6, %v299_v36  ;;  %v369_v48 = vmul.f32 %v1525_v50, %v340_v55  ;;  %v370_v49 = vmul.f32 %v1529_v18, %v343_v47  ;;  %1865 = vst [vmem:[#allocation4_spill] sm:$0xff] %v1555_v9 }
  0xab   :  { %v506_v51 = vsel %vm451_vm2, %v328_v32, %v448_v20  ;;  %v502_v1 = vsel %vm451_vm2, %v327_v28, %v447_v27  ;;  %1866 = vst [vmem:[#allocation5_spill] sm:$0xff] %v1558_v11 }
  0xac   :  { %v373_v0 = vpack.c.bf16 %v369_v48, %v369_v48  ;;  %v374_v3 = vpack.c.bf16 %v370_v49, %v370_v49  ;;  %538 = vmatprep.subr.bf16.mxu0 %v506_v51  ;;  %v378_v56 = vpop.permute.xlu1 %377  ;;  %v376_v13 = vpop.permute.xlu0 %375  ;;  %v329_v43 = vpack.c.bf16 %v325_v8, %v325_v8  ;;  %v330_v20 = vpack.c.bf16 %v326_v26, %v326_v26 }
  0xad   :  { %v386_v59 = vsel %vm383_vm8, %v376_v13, %v378_v56  ;;  %539 = vmatpush1.bf16.msra.mxu0 %v502_v1 }
  0xae   :  { %v449_v27 = vrot.slane %v373_v0, 4  ;;  %v450_v28 = vrot.slane %v374_v3, 4  ;;  %v411_v32 = vmul.f32 %v1533_v19, %v386_v59  ;;  %v30_v0 = vld [vmem:[%s1852_s2] sm:$0x3] }
  0xb0   :  { %v382_v40 = vpop.permute.xlu1 %381  ;;  %v380_v30 = vpop.permute.xlu0 %379  ;;  %v514_v25 = vsel %vm451_vm2, %v330_v20, %v450_v28  ;;  %v510_v37 = vsel %vm451_vm2, %v329_v43, %v449_v27  ;;  %v415_v57 = vpack.c.bf16 %v411_v32, %v411_v32 }
  0xb1   :  { %v387_v36 = vsel %vm383_vm8, %v382_v40, %v376_v13  ;;  %v384_v10 = vsel %vm383_vm8, %v380_v30, %v382_v40  ;;  %v385_v21 = vsel %vm383_vm8, %v378_v56, %v380_v30  ;;  %579 = vmatprep.subr.bf16.mxu1 %v514_v25 }
  0xb2   :  { %v414_v55 = vmul.f32 %v1550_v58, %v387_v36  ;;  %v412_v47 = vmul.f32 %v1555_v9, %v385_v21  ;;  %v413_v8 = vmul.f32 %v1558_v11, %v384_v10  ;;  %580 = vmatpush1.bf16.msra.mxu1 %v510_v37  ;;  %v521_v51 = vsel %vm451_vm2, %v415_v57, 0 }
  0xb4   :  { %v418_v26 = vpack.c.bf16 %v414_v55, %v414_v55  ;;  %v416_v48 = vpack.c.bf16 %v412_v47, %v412_v47  ;;  %v417_v49 = vpack.c.bf16 %v413_v8, %v413_v8 }
  0xb6   :  { %1128 = vmatprep.subr.msk.bf16.mxu0 %vm451_vm2, %v416_v48  ;;  %1130 = vmatprep.subr.msk.bf16.mxu1 %vm451_vm2, %v418_v26  ;;  %v527_v1 = vsel %vm451_vm2, %v417_v49, 0 }
  0xb7   :  { %541 = vmatpush1.bf16.msra.mxu0 %v521_v51  ;;  %582 = vmatpush1.bf16.msra.mxu1 %v527_v1 }
  0xba   :  { %1129 = vmatmul.mubr.msk.bf16.vlgmr.msra.gmra.mrb[0].mxu0 %vm516_vm9, %v30_v0  ;;  %1131 = vmatmul.mubr.msk.bf16.vlgmr.msra.gmra.mrb[0].mxu1 %vm516_vm9, %v30_v0 }
  0xbb   :  { %1001 = vmatprep.mubr.bf16.mxu0 %v1158_v4  ;;  %1042 = vmatprep.mubr.bf16.mxu1 %v1158_v4 }
 0x18d   :  { %v566_v3 = vpop.f32.mrb[0].mxu0  ;;  %v607_v56 = vpop.f32.mrb[0].mxu1 }
 0x18e   :  { %v614_v13 = vsel %vm451_vm2, %v566_v3, 0.0  ;;  %v625_v43 = vmul.f32 %v566_v3, %v566_v3  ;;  %v627_v59 = vmul.f32 %v607_v56, %v607_v56  ;;  %v568_v20 = vpop.f32.mrb[1].mxu0  ;;  %v609_v27 = vpop.f32.mrb[1].mxu1  ;;  %v617_v28 = vsel %vm451_vm2, %v607_v56, 0.0 }
 0x18f   :  { %v615_v32 = vsel %vm451_vm2, %v568_v20, 0.0  ;;  %v626_v40 = vmul.f32 %v568_v20, %v568_v20  ;;  %v570_v30 = vpop.f32.mrb[2].mxu0  ;;  %v611_v25 = vpop.f32.mrb[2].mxu1  ;;  %v628_v57 = vmul.f32 %v609_v27, %v609_v27  ;;  %v619_v26 = vsel %vm451_vm2, %v609_v27, 0.0 }
 0x190   :  { %v629_v37 = vsel %vm451_vm2, %v625_v43, 0.0  ;;  %v616_v36 = vadd.f32 %v615_v32, %v614_v13  ;;  %v571_v10 = vpop.f32.mrb[3].mxu0  ;;  %v612_v4 = vpop.f32.mrb[3].mxu1  ;;  %v632_v55 = vsel %vm451_vm2, %v627_v59, 0.0  ;;  %v641_v59 = vld [vmem:[%s1853_s3] sm:$0xf] }
 0x191   :  { %v630_v21 = vsel %vm451_vm2, %v626_v40, 0.0  ;;  %v634_v51 = vsel %vm451_vm2, %v628_v57, 0.0 }
 0x192   :  { %v618_v47 = vadd.f32 %v617_v28, %v616_v36  ;;  %v631_v8 = vadd.f32 %v630_v21, %v629_v37  ;;  %v645_v36 = vld [vmem:[%s1854_s4] sm:$0xf] }
 0x194   :  { %v620_v48 = vadd.f32 %v619_v26, %v618_v47  ;;  %v633_v49 = vadd.f32 %v632_v55, %v631_v8 }
 0x196   :  { %621 = vadd.xlane.f32.xlu0 %v620_v48  ;;  %v635_v1 = vadd.f32 %v634_v51, %v633_v49 }
 0x198   :  { %636 = vadd.xlane.f32.xlu1 %v635_v1 }
 0x223   :  { %v622_v0 = vpop.xlane.xlu0 %621 }
 0x224   :  { %v624_v13 = vmul.f32 0.001953125, %v622_v0 }
 0x225   :  { %v637_v43 = vpop.xlane.xlu1 %636 }
 0x226   :  { %v639_v32 = vmul.f32 %v624_v13, %v624_v13  ;;  %v638_v30 = vmul.f32 0.001953125, %v637_v43 }
 0x228   :  { %v640_v40 = vsub.f32 %v638_v30, %v639_v32 }
 0x22a   :  { %v642_v25 = vadd.f32 1e-05, %v640_v40 }
 0x22c   :  { %1147 = vrsqrt.f32 %v642_v25 }
 0x236   :  { %v1148_v28 = vpop.eup %1147 }
 0x237   :  { %v644_v37 = vmul.f32 %v1148_v28, %v641_v59 }
 0x239   :  { %650 = vperm.xlu0 %1145, %v644_v37   ;;  %v646_v10 = vmul.f32 %v644_v37, %v624_v13 }
 0x23b   :  { %v647_v4 = vsub.f32 %v645_v36, %v646_v10 }
 0x23d   :  { %659 = vperm.xlu1 %1146, %v647_v4  }
 0x2b8   :  { %v651_v21 = vpop.permute.xlu0 %650 }
 0x2b9   :  { %v653_v57 = vmul.f32 %v651_v21, %v566_v3  ;;  %v654_v55 = vmul.f32 %v651_v21, %v568_v20  ;;  %v656_v51 = vmul.f32 %v651_v21, %v609_v27  ;;  %v655_v20 = vmul.f32 %v651_v21, %v607_v56 }
 0x2bc   :  { %v660_v47 = vpop.permute.xlu1 %659 }
 0x2bd   :  { %v662_v8 = vadd.f32 %v660_v47, %v653_v57  ;;  %v663_v26 = vadd.f32 %v660_v47, %v654_v55  ;;  %v665_v1 = vadd.f32 %v660_v47, %v656_v51  ;;  %v664_v27 = vadd.f32 %v660_v47, %v655_v20 }
 0x2bf   :  { %v1595_v48 = vmax.f32 %v662_v8, 0.0  ;;  %v1597_v49 = vmax.f32 %v663_v26, 0.0  ;;  %v1607_v3 = vmax.f32 %v665_v1, 0.0  ;;  %v1621_v0 = vmax.f32 %v664_v27, 0.0 }
 0x2c1   :  { %673 = vrot.lane.b32.xlu0 %v1597_v49, %s1152_s12  ;;  %691 = vrot.lane.b32.xlu1 %v1595_v48, %s1151_s9 }
 0x2c5   :  { %731 = vrot.lane.b32.xlu0 %v1595_v48, %s1153_s15  ;;  %693 = vrot.lane.b32.xlu1 %v1597_v49, %s1151_s9 }
 0x2c9   :  { %677 = vrot.lane.b32.xlu0 %v1607_v3, %s1152_s12  ;;  %697 = vrot.lane.b32.xlu1 %v1607_v3, %s1151_s9 }
 0x2cd   :  { %737 = vrot.lane.b32.xlu0 %v1607_v3, %s1153_s15  ;;  %711 = vrot.lane.b32.xlu1 %v1595_v48, %s1154_s16 }
 0x2d1   :  { %761 = vrot.lane.b32.xlu0 %v1597_v49, %s1155_s0  ;;  %713 = vrot.lane.b32.xlu1 %v1597_v49, %s1154_s16 }
 0x2d5   :  { %675 = vrot.lane.b32.xlu0 %v1621_v0, %s1152_s12  ;;  %671 = vrot.lane.b32.xlu1 %v1595_v48, %s1152_s12 }
 0x2d9   :  { %759 = vrot.lane.b32.xlu0 %v1595_v48, %s1155_s0  ;;  %717 = vrot.lane.b32.xlu1 %v1607_v3, %s1154_s16 }
 0x2dd   :  { %783 = vrot.lane.b32.xlu0 %v1621_v0, %s1157_s18  ;;  %733 = vrot.lane.b32.xlu1 %v1597_v49, %s1153_s15 }
 0x2e1   :  { %801 = vrot.lane.b32.xlu0 %v1597_v49, %s1156_s17  ;;  %695 = vrot.lane.b32.xlu1 %v1621_v0, %s1151_s9 }
 0x2e5   :  { %765 = vrot.lane.b32.xlu0 %v1607_v3, %s1155_s0  ;;  %715 = vrot.lane.b32.xlu1 %v1621_v0, %s1154_s16 }
 0x2e9   :  { %785 = vrot.lane.b32.xlu0 %v1607_v3, %s1157_s18  ;;  %763 = vrot.lane.b32.xlu1 %v1621_v0, %s1155_s0 }
 0x2ed   :  { %819 = vrot.lane.b32.xlu0 %v1595_v48, %s1159_s19  ;;  %735 = vrot.lane.b32.xlu1 %v1621_v0, %s1153_s15 }
 0x2f1   :  { %823 = vrot.lane.b32.xlu0 %v1621_v0, %s1159_s19  ;;  %781 = vrot.lane.b32.xlu1 %v1597_v49, %s1157_s18 }
 0x2f5   :  { %779 = vrot.lane.b32.xlu1 %v1595_v48, %s1157_s18 }
 0x2f9   :  { %803 = vrot.lane.b32.xlu1 %v1621_v0, %s1156_s17 }
 0x2fd   :  { %799 = vrot.lane.b32.xlu1 %v1595_v48, %s1156_s17 }
 0x301   :  { %805 = vrot.lane.b32.xlu1 %v1607_v3, %s1156_s17 }
 0x305   :  { %821 = vrot.lane.b32.xlu1 %v1597_v49, %s1159_s19 }
 0x309   :  { %825 = vrot.lane.b32.xlu1 %v1607_v3, %s1159_s19 }
 0x333   :  { %v1667_v56 = vpop.permute.xlu0 %673  ;;  %v692_v13 = vpop.permute.xlu1 %691 }
 0x337   :  { %v732_v43 = vpop.permute.xlu0 %731  ;;  %v694_v32 = vpop.permute.xlu1 %693 }
 0x338   :  { %v701_v36 = vsel %vm88_vm0, %v692_v13, %v694_v32 }
 0x339   :  { %v704_v57 = vmul.f32 %v701_v36, %v1309_v15 }
 0x33b   :  { %v1669_v30 = vpop.permute.xlu0 %677  ;;  %v698_v40 = vpop.permute.xlu1 %697  ;;  %v708_v36 = vpack.c.bf16 %v704_v57, %v704_v57 }
 0x33c   :  { %v702_v10 = vsel %vm88_vm0, %v698_v40, %v692_v13 }
 0x33d   :  { %v703_v8 = vmul.f32 %v702_v10, %v1304_v12 }
 0x33f   :  { %v1671_v25 = vpop.permute.xlu0 %737  ;;  %v712_v59 = vpop.permute.xlu1 %711  ;;  %v707_v58 = vpack.c.bf16 %v703_v8, %v703_v8 }
 0x340   :  { %v742_v51 = vsel %vm176_vm3, %v1671_v25, %v732_v43 }
 0x341   :  { %v743_v12 = vmul.f32 %v742_v51, %v1371_v61  ;;  %v843_v57 = vrot.slane %v707_v58, 6 }
 0x343   :  { %v714_v28 = vpop.permute.xlu1 %713  ;;  %v1673_v37 = vpop.permute.xlu0 %761 }
 0x344   :  { %v721_v55 = vsel %vm132_vm4, %v712_v59, %v714_v28 }
 0x345   :  { %v724_v27 = vmul.f32 %v721_v55, %v1387_v22  ;;  %v844_v22 = vrot.slane %v708_v36, 6 }
 0x347   :  { %v672_v4 = vpop.permute.xlu1 %671  ;;  %v676_v26 = vpop.permute.xlu0 %675  ;;  %v728_v19 = vpack.c.bf16 %v724_v27, %v724_v27 }
 0x348   :  { %v681_v21 = vsel %vm45_vm1, %v672_v4, %v1667_v56  ;;  %v682_v47 = vsel %vm45_vm1, %v1669_v30, %v672_v4 }
 0x349   :  { %v684_v1 = vmul.f32 %v681_v21, %v1325_v24  ;;  %v683_v15 = vmul.f32 %v682_v47, %v1322_v23  ;;  %v852_v51 = vrot.slane %v728_v19, 4 }
 0x34b   :  { %v718_v20 = vpop.permute.xlu1 %717  ;;  %v688_v10 = vpack.c.bf16 %v684_v1, %v684_v1  ;;  %v687_v24 = vpack.c.bf16 %v683_v15, %v683_v15  ;;  %v1699_v21 = vpop.permute.xlu0 %759 }
 0x34c   :  { %v722_v13 = vsel %vm132_vm4, %v718_v20, %v712_v59 }
 0x34d   :  { %v723_v4 = vmul.f32 %v722_v13, %v1381_v17  ;;  %v747_v17 = vpack.c.bf16 %v743_v12, %v743_v12  ;;  %v893_v61 = vsel %vm887_vm10, %v688_v10, %v844_v22  ;;  %v890_v1 = vsel %vm887_vm10, %v687_v24, %v843_v57 }
 0x34e   :  { %v903_v58 = vsel %vm451_vm2, %v893_v61, %v852_v51 }
 0x34f   :  { %v727_v11 = vpack.c.bf16 %v723_v4, %v723_v4  ;;  %v734_v9 = vpop.permute.xlu1 %733  ;;  %v859_v13 = vrot.slane %v747_v17, 2 }
 0x350   :  { %v741_v23 = vsel %vm176_vm3, %v732_v43, %v734_v9 }
 0x351   :  { %v851_v55 = vrot.slane %v727_v11, 4  ;;  %v744_v59 = vmul.f32 %v741_v23, %v1360_v54  ;;  %v1709_v11 = vpop.permute.xlu0 %783 }
 0x353   :  { %v748_v47 = vpack.c.bf16 %v744_v59, %v744_v59  ;;  %v696_v8 = vpop.permute.xlu1 %695  ;;  %v901_v43 = vsel %vm451_vm2, %v890_v1, %v851_v55 }
 0x354   :  { %v699_v15 = vsel %vm88_vm0, %v696_v8, %v698_v40  ;;  %v700_v54 = vsel %vm88_vm0, %v694_v32, %v696_v8  ;;  %v910_v10 = vsel %vm908_vm11, %v901_v43, %v859_v13 }
 0x355   :  { %v860_v27 = vrot.slane %v748_v47, 2  ;;  %v706_v4 = vmul.f32 %v699_v15, %v1339_v35  ;;  %v705_v24 = vmul.f32 %v700_v54, %v1336_v34  ;;  %v679_v35 = vsel %vm45_vm1, %v676_v26, %v1669_v30 }
 0x356   :  { %v686_v34 = vmul.f32 %v679_v35, %v1350_v45 }
 0x357   :  { %v716_v36 = vpop.permute.xlu1 %715  ;;  %v913_v19 = vsel %vm908_vm11, %v903_v58, %v860_v27  ;;  %v710_v55 = vpack.c.bf16 %v706_v4, %v706_v4  ;;  %v709_v59 = vpack.c.bf16 %v705_v24, %v705_v24 }
 0x358   :  { %v719_v12 = vsel %vm132_vm4, %v716_v36, %v718_v20  ;;  %v720_v40 = vsel %vm132_vm4, %v714_v28, %v716_v36  ;;  %969 = vmatprep.subr.bf16.mxu0 %v913_v19  ;;  %v680_v20 = vsel %vm45_vm1, %v1667_v56, %v676_v26  ;;  %v1730_v28 = vpop.permute.xlu0 %801  ;;  %v690_v51 = vpack.c.bf16 %v686_v34, %v686_v34 }
 0x359   :  { %970 = vmatpush1.bf16.msra.mxu0 %v910_v10  ;;  %v725_v32 = vmul.f32 %v720_v40, %v1411_v41  ;;  %v726_v23 = vmul.f32 %v719_v12, %v1414_v42  ;;  %v685_v41 = vmul.f32 %v680_v20, %v1347_v44  ;;  %v846_v47 = vrot.slane %v710_v55, 6 }
 0x35a   :  { %v845_v56 = vrot.slane %v709_v59, 6  ;;  %v769_v19 = vsel %vm251_vm5, %v1699_v21, %v1673_v37 }
 0x35b   :  { %v764_v22 = vpop.permute.xlu1 %763  ;;  %v729_v57 = vpack.c.bf16 %v725_v32, %v725_v32  ;;  %v730_v17 = vpack.c.bf16 %v726_v23, %v726_v23  ;;  %v689_v15 = vpack.c.bf16 %v685_v41, %v685_v41 }
 0x35c   :  { %v766_v45 = vpop.permute.xlu0 %765  ;;  %v768_v44 = vsel %vm251_vm5, %v1673_v37, %v764_v22  ;;  %v771_v37 = vmul.f32 %v769_v19, %v1448_v14  ;;  %v752_v14 = vmul.f32 %v1597_v49, %v1397_v33 }
 0x35d   :  { %v853_v1 = vrot.slane %v729_v57, 4  ;;  %v854_v27 = vrot.slane %v730_v17, 4  ;;  %v896_v36 = vsel %vm887_vm10, %v689_v15, %v845_v56  ;;  %v767_v23 = vsel %vm251_vm5, %v764_v22, %v766_v45 }
 0x35e   :  { %v773_v22 = vmul.f32 %v767_v23, %v1431_v62  ;;  %v756_v33 = vpack.c.bf16 %v752_v14, %v752_v14 }
 0x35f   :  { %v736_v42 = vpop.permute.xlu1 %735  ;;  %v905_v40 = vsel %vm451_vm2, %v896_v36, %v853_v1 }
 0x360   :  { %v739_v30 = vsel %vm176_vm3, %v736_v42, %v1671_v25  ;;  %v740_v8 = vsel %vm176_vm3, %v734_v9, %v736_v42  ;;  %v786_v32 = vpop.permute.xlu0 %785  ;;  %v777_v56 = vpack.c.bf16 %v773_v22, %v773_v22 }
 0x361   :  { %v745_v26 = vmul.f32 %v740_v8, %v1402_v38  ;;  %v746_v61 = vmul.f32 %v739_v30, %v1405_v39  ;;  %v899_v38 = vsel %vm887_vm10, %v690_v51, %v846_v47  ;;  %v772_v39 = vmul.f32 %v768_v44, %v1422_v53 }
 0x362   :  { %v907_v12 = vsel %vm451_vm2, %v899_v38, %v854_v27  ;;  %v787_v34 = vsel %vm295_vm7, %v1709_v11, %v786_v32 }
 0x363   :  { %v749_v43 = vpack.c.bf16 %v745_v26, %v745_v26  ;;  %v750_v13 = vpack.c.bf16 %v746_v61, %v746_v61  ;;  %v782_v25 = vpop.permute.xlu1 %781  ;;  %v776_v20 = vpack.c.bf16 %v772_v39, %v772_v39 }
 0x364   :  { %v788_v9 = vsel %vm295_vm7, %v782_v25, %v1709_v11  ;;  %v793_v11 = vmul.f32 %v787_v34, %v1516_v60  ;;  %v753_v60 = vmul.f32 %v1621_v0, %v1445_v5 }
 0x365   :  { %v861_v54 = vrot.slane %v749_v43, 2  ;;  %v862_v58 = vrot.slane %v750_v13, 2  ;;  %v792_v4 = vmul.f32 %v788_v9, %v1506_v52  ;;  %v770_v52 = vsel %vm251_vm5, %v766_v45, %v1699_v21  ;;  %v820_v45 = vpop.permute.xlu0 %819 }
 0x366   :  { %v774_v21 = vmul.f32 %v770_v52, %v1451_v16  ;;  %v868_v42 = vrot.slane %v776_v20, 6  ;;  %v751_v16 = vmul.f32 %v1595_v48, %v1439_v63  ;;  %v797_v15 = vpack.c.bf16 %v793_v11, %v793_v11  ;;  %v1867_v20 = vld [vmem:[#allocation2_spill] sm:$0xff]  ;;  %v1869_v11 = vld [vmem:[#allocation5_spill] sm:$0xff] }
 0x367   :  { %v780_v10 = vpop.permute.xlu1 %779  ;;  %v919_v24 = vsel %vm908_vm11, %v907_v12, %v862_v58  ;;  %v916_v53 = vsel %vm908_vm11, %v905_v40, %v861_v54  ;;  %v796_v55 = vpack.c.bf16 %v792_v4, %v792_v4  ;;  %v869_v13 = vrot.slane %v777_v56, 6 }
 0x368   :  { %v789_v35 = vsel %vm295_vm7, %v780_v10, %v782_v25  ;;  %1010 = vmatprep.subr.bf16.mxu1 %v919_v24  ;;  %v790_v57 = vsel %vm295_vm7, %v786_v32, %v780_v10  ;;  %v778_v49 = vpack.c.bf16 %v774_v21, %v774_v21  ;;  %v926_v44 = vsel %vm887_vm10, %v756_v33, %v868_v42 }
 0x369   :  { %1011 = vmatpush1.bf16.msra.mxu1 %v916_v53  ;;  %v791_v59 = vmul.f32 %v789_v35, %v1503_v46  ;;  %v775_v46 = vpack.c.bf16 %v771_v37, %v771_v37  ;;  %v876_v62 = vrot.slane %v796_v55, 4  ;;  %v794_v30 = vmul.f32 %v790_v57, %v1519_v6  ;;  %v824_v40 = vpop.permute.xlu0 %823 }
 0x36a   :  { %v870_v9 = vrot.slane %v778_v49, 6  ;;  %v757_v0 = vpack.c.bf16 %v753_v60, %v753_v60  ;;  %v877_v36 = vrot.slane %v797_v15, 4 }
 0x36b   :  { %v804_v17 = vpop.permute.xlu1 %803  ;;  %v795_v8 = vpack.c.bf16 %v791_v59, %v791_v59  ;;  %v867_v6 = vrot.slane %v775_v46, 6  ;;  %v798_v63 = vpack.c.bf16 %v794_v30, %v794_v30  ;;  %v936_v43 = vsel %vm451_vm2, %v926_v44, %v876_v62  ;;  %v1868_v59 = vld [vmem:[#allocation4_spill] sm:$0xff]  ;;  %v1870_v30 = vld [vmem:[#allocation3_spill] sm:$0xff] }
 0x36c   :  { %v808_v41 = vsel %vm339_vm6, %v1730_v28, %v804_v17  ;;  %v929_v23 = vsel %vm887_vm10, %v757_v0, %v869_v13 }
 0x36d   :  { %v812_v47 = vmul.f32 %v808_v41, %v1464_v31  ;;  %v754_v31 = vmul.f32 %v1607_v3, %v1442_v2  ;;  %v875_v48 = vrot.slane %v795_v8, 4  ;;  %v755_v3 = vpack.c.bf16 %v751_v16, %v751_v16 }
 0x36e   :  { %v878_v19 = vrot.slane %v798_v63, 4  ;;  %v938_v57 = vsel %vm451_vm2, %v929_v23, %v877_v36  ;;  %v1081_v23 = vld [vmem:[%s1857_s7] sm:$0xf] }
 0x36f   :  { %v816_v26 = vpack.c.bf16 %v812_v47, %v812_v47  ;;  %v800_v61 = vpop.permute.xlu1 %799  ;;  %v923_v58 = vsel %vm887_vm10, %v755_v3, %v867_v6  ;;  %v758_v12 = vpack.c.bf16 %v754_v31, %v754_v31 }
 0x370   :  { %v809_v51 = vsel %vm339_vm6, %v800_v61, %v1730_v28  ;;  %v934_v4 = vsel %vm451_vm2, %v923_v58, %v875_v48 }
 0x371   :  { %v884_v1 = vrot.slane %v816_v26, 2  ;;  %v811_v27 = vmul.f32 %v809_v51, %v1489_v29  ;;  %v932_v35 = vsel %vm887_vm10, %v758_v12, %v870_v9  ;;  %v670_v26 = vld [vmem:[%s1855_s5] sm:$0x3] }
 0x372   :  { %v940_v22 = vsel %vm451_vm2, %v932_v35, %v878_v19 }
 0x373   :  { %v815_v28 = vpack.c.bf16 %v811_v27, %v811_v27  ;;  %v806_v25 = vpop.permute.xlu1 %805  ;;  %v945_v2 = vsel %vm908_vm11, %v936_v43, %v884_v1 }
 0x374   :  { %v807_v5 = vsel %vm339_vm6, %v804_v17, %v806_v25  ;;  %v810_v29 = vsel %vm339_vm6, %v806_v25, %v800_v61  ;;  %971 = vmatprep.subr.bf16.mxu0 %v945_v2 }
 0x375   :  { %v883_v38 = vrot.slane %v815_v28, 2  ;;  %v813_v39 = vmul.f32 %v807_v5, %v1525_v50  ;;  %v814_v54 = vmul.f32 %v810_v29, %v1529_v18 }
 0x377   :  { %v817_v10 = vpack.c.bf16 %v813_v39, %v813_v39  ;;  %v818_v24 = vpack.c.bf16 %v814_v54, %v814_v54  ;;  %v822_v53 = vpop.permute.xlu1 %821  ;;  %v942_v32 = vsel %vm908_vm11, %v934_v4, %v883_v38 }
 0x378   :  { %v828_v50 = vsel %vm383_vm8, %v822_v53, %v824_v40  ;;  %v829_v18 = vsel %vm383_vm8, %v820_v45, %v822_v53  ;;  %972 = vmatpush1.bf16.msra.mxu0 %v942_v32 }
 0x379   :  { %v885_v37 = vrot.slane %v817_v10, 2  ;;  %v886_v52 = vrot.slane %v818_v24, 2  ;;  %v831_v55 = vmul.f32 %v829_v18, %v1867_v20  ;;  %v832_v34 = vmul.f32 %v828_v50, %v1868_v59  ;;  %v1077_v24 = vld [vmem:[%s1856_s6] sm:$0xf] }
 0x37b   :  { %v835_v17 = vpack.c.bf16 %v831_v55, %v831_v55  ;;  %v836_v14 = vpack.c.bf16 %v832_v34, %v832_v34  ;;  %v826_v21 = vpop.permute.xlu1 %825  ;;  %v951_v41 = vsel %vm908_vm11, %v940_v22, %v886_v52  ;;  %v948_v46 = vsel %vm908_vm11, %v938_v57, %v885_v37 }
 0x37c   :  { %v827_v42 = vsel %vm383_vm8, %v824_v40, %v826_v21  ;;  %v830_v47 = vsel %vm383_vm8, %v826_v21, %v820_v45  ;;  %1012 = vmatprep.subr.bf16.mxu1 %v951_v41 }
 0x37d   :  { %v833_v62 = vmul.f32 %v827_v42, %v1869_v11  ;;  %v834_v8 = vmul.f32 %v830_v47, %v1870_v30  ;;  %1132 = vmatprep.subr.msk.bf16.mxu0 %vm887_vm10, %v836_v14  ;;  %1013 = vmatpush1.bf16.msra.mxu1 %v948_v46  ;;  %v958_v56 = vsel %vm887_vm10, %v835_v17, 0 }
 0x37e   :  { %974 = vmatpush1.bf16.msra.mxu0 %v958_v56 }
 0x37f   :  { %v837_v61 = vpack.c.bf16 %v833_v62, %v833_v62  ;;  %v838_v33 = vpack.c.bf16 %v834_v8, %v834_v8 }
 0x381   :  { %1133 = vmatmul.mubr.msk.bf16.vlgmr.msra.gmra.mrb[4].mxu0 %vm953_vm12, %v670_v26  ;;  %1134 = vmatprep.subr.msk.bf16.mxu1 %vm887_vm10, %v838_v33  ;;  %v964_v7 = vsel %vm887_vm10, %v837_v61, 0 }
 0x382   :  { %1015 = vmatpush1.bf16.msra.mxu1 %v964_v7 }
 0x385   :  { %1135 = vmatmul.mubr.msk.bf16.vlgmr.msra.gmra.mrb[4].mxu1 %vm953_vm12, %v670_v26 }
 0x454   :  { %v1003_v16 = vpop.f32.mrb[4].mxu0 }
 0x455   :  { %v1051_v49 = vsel %vm451_vm2, %v1003_v16, 0.0  ;;  %v1061_v51 = vmul.f32 %v1003_v16, %v1003_v16  ;;  %v1005_v31 = vpop.f32.mrb[5].mxu0 }
 0x456   :  { %v1052_v60 = vsel %vm451_vm2, %v1005_v31, 0.0  ;;  %v1062_v6 = vmul.f32 %v1005_v31, %v1005_v31  ;;  %v1007_v45 = vpop.f32.mrb[6].mxu0 }
 0x457   :  { %v1065_v1 = vsel %vm451_vm2, %v1061_v51, 0.0  ;;  %v1053_v27 = vadd.f32 %v1052_v60, %v1051_v49  ;;  %v1008_v44 = vpop.f32.mrb[7].mxu0 }
 0x458   :  { %v1066_v15 = vsel %vm451_vm2, %v1062_v6, 0.0  ;;  %v1044_v63 = vpop.f32.mrb[4].mxu1 }
 0x459   :  { %v1054_v48 = vsel %vm451_vm2, %v1044_v63, 0.0  ;;  %v1063_v43 = vmul.f32 %v1044_v63, %v1044_v63  ;;  %v1046_v13 = vpop.f32.mrb[5].mxu1  ;;  %v1067_v28 = vadd.f32 %v1066_v15, %v1065_v1 }
 0x45a   :  { %v1064_v25 = vmul.f32 %v1046_v13, %v1046_v13  ;;  %v1048_v2 = vpop.f32.mrb[6].mxu1  ;;  %v1055_v3 = vadd.f32 %v1054_v48, %v1053_v27  ;;  %v1056_v9 = vsel %vm451_vm2, %v1046_v13, 0.0 }
 0x45b   :  { %v1049_v5 = vpop.f32.mrb[7].mxu1  ;;  %v1068_v29 = vsel %vm451_vm2, %v1063_v43, 0.0 }
 0x45c   :  { %v1057_v0 = vadd.f32 %v1056_v9, %v1055_v3  ;;  %v1069_v38 = vadd.f32 %v1068_v29, %v1067_v28  ;;  %v1070_v39 = vsel %vm451_vm2, %v1064_v25, 0.0 }
 0x45e   :  { %1058 = vadd.xlane.f32.xlu0 %v1057_v0  ;;  %v1071_v54 = vadd.f32 %v1070_v39, %v1069_v38 }
 0x460   :  { %1072 = vadd.xlane.f32.xlu1 %v1071_v54 }
 0x4eb   :  { %v1059_v58 = vpop.xlane.xlu0 %1058 }
 0x4ec   :  { %v1060_v36 = vmul.f32 0.001953125, %v1059_v58 }
 0x4ed   :  { %v1073_v19 = vpop.xlane.xlu1 %1072 }
 0x4ee   :  { %v1075_v4 = vmul.f32 %v1060_v36, %v1060_v36  ;;  %v1074_v12 = vmul.f32 0.001953125, %v1073_v19 }
 0x4f0   :  { %v1076_v40 = vsub.f32 %v1074_v12, %v1075_v4 }
 0x4f2   :  { %v1078_v10 = vadd.f32 1e-05, %v1076_v40 }
 0x4f4   :  { %1149 = vrsqrt.f32 %v1078_v10 }
 0x4fe   :  { %v1150_v53 = vpop.eup %1149 }
 0x4ff   :  { %v1080_v32 = vmul.f32 %v1150_v53, %v1077_v24 }
 0x501   :  { %1086 = vperm.xlu0 %1145, %v1080_v32   ;;  %v1082_v50 = vmul.f32 %v1080_v32, %v1060_v36 }
 0x503   :  { %v1083_v18 = vsub.f32 %v1081_v23, %v1082_v50 }
 0x505   :  { %1095 = vperm.xlu1 %1146, %v1083_v18  }
 0x580   :  { %v1087_v35 = vpop.permute.xlu0 %1086 }
 0x581   :  { %v1089_v37 = vmul.f32 %v1087_v35, %v1003_v16  ;;  %v1090_v52 = vmul.f32 %v1087_v35, %v1005_v31  ;;  %v1091_v20 = vmul.f32 %v1087_v35, %v1044_v63  ;;  %v1092_v55 = vmul.f32 %v1087_v35, %v1046_v13 }
 0x584   :  { %v1096_v59 = vpop.permute.xlu1 %1095 }
 0x585   :  { %v1098_v34 = vadd.f32 %v1096_v59, %v1089_v37  ;;  %v1099_v22 = vadd.f32 %v1096_v59, %v1090_v52  ;;  %v1100_v57 = vadd.f32 %v1096_v59, %v1091_v20  ;;  %v1101_v17 = vadd.f32 %v1096_v59, %v1092_v55 }
 0x587   :  { %v1102_v14 = vmax.f32 %v1098_v34, 0.0  ;;  %v1103_v21 = vmax.f32 %v1099_v22, 0.0  ;;  %v1104_v41 = vmax.f32 %v1100_v57, 0.0  ;;  %v1105_v46 = vmax.f32 %v1101_v17, 0.0 }
 0x589   :  { %v1110_v42 = vcombine.low %v1102_v14, %v1103_v21  ;;  %v1111_v47 = vcombine.low %v1104_v41, %v1105_v46 }
 0x58b   :  { %1114 = vst [vmem:[%s1858_s8] sm:$0xff] %v1110_v42  ;;  %1115 = vst [vmem:[%s1858_s8 + $0x8] sm:$0xff] %v1111_v47 }

</bundles_post_ra>
